<compile_context>
chip_gen: v5e
topology: v5e:2x2
jax: 0.10.0
libtpu: 0.0.40
codegen_flags: <defaults>
</compile_context>

<pallas_src>
import jax
import jax.numpy as jnp
from jax import lax
from jax.experimental import pallas as pl
from jax.experimental.pallas import tpu as pltpu


def _round_up(v, m):
    return (v + m - 1) // m * m


def _pick_tile(dim, align, cap):
    """Largest tile (multiple of `align`, <= `cap`) minimizing padding of `dim`."""
    dim_a = _round_up(max(dim, 1), align)
    best_t, best_waste = align, None
    t = align
    while t <= cap:
        waste = _round_up(dim_a, t) - dim_a
        if best_waste is None or waste < best_waste or (waste == best_waste and t > best_t):
            best_t, best_waste = t, waste
        t += align
    return best_t


def linear_kernel(x_ref, w_ref, b_ref, o_ref, acc_ref):
    # x_ref: (tm, tk)   activation tile
    # w_ref: (tk, tn)   weight tile already in [D_in, D_out] layout -> clean MXU feed
    # b_ref: (1,  tn)   bias tile (index constant in k -> fetched once per (i, j))
    # o_ref: (tm, tn)   output tile
    # acc_ref: (tm, tn) f32 accumulator, resident in VMEM across the K axis
    k = pl.program_id(2)

    @pl.when(k == 0)
    def _():
        acc_ref[...] = jnp.zeros_like(acc_ref)

    acc_ref[...] += jnp.dot(x_ref[...], w_ref[...],
                            preferred_element_type=jnp.float32)

    @pl.when(k == pl.num_programs(2) - 1)
    def _():
        o_ref[...] = (acc_ref[...] + b_ref[...]).astype(o_ref.dtype)


def _weight_spec(tk, tn, multibuffer):
    index_map = lambda i, j, k: (k, j)
    if multibuffer:
        try:
            # 3-deep pipelining of the weight stream (weight-streaming regime).
            return pl.BlockSpec((tk, tn), index_map, pipeline_mode=pl.Buffered(3))
        except Exception:  # pipeline_mode / Buffered not available -> default 2-deep
            pass
    return pl.BlockSpec((tk, tn), index_map)


# Caps chosen so the worst-case f32 double-buffered footprint (~11 MiB at
# 512/512/1024) fits every generation's scoped-VMEM default, incl. v7x (64 MiB
# physical / 32 MiB scoped).
_TM_CAP, _TN_CAP, _TK_CAP = 512, 512, 1024


def operator_forward(x, weight, bias, *, tm=None, tn=None, tk=None, use_pallas=None):
    """Pallas forward of nn.Linear: returns x @ weight.T + bias.

    x:      [..., D_in]
    weight: [D_out, D_in]   (PyTorch convention)
    bias:   [D_out]
    """
    orig_shape = x.shape
    D_in = orig_shape[-1]
    D_out = weight.shape[0]
    out_dtype = x.dtype
    if x.ndim != 2:
        x = x.reshape(-1, D_in)
    B = x.shape[0]

    # One-time transpose to [D_in, D_out]: canonical lhs @ rhs for the MXU.
    w_t = weight.T
    if w_t.dtype != x.dtype:
        w_t = w_t.astype(x.dtype)

    # --- tile selection (minimize padding waste, stay inside VMEM caps) ------
    tm = tm or _pick_tile(B, 8, _TM_CAP)
    tk = tk or _pick_tile(D_in, 128, _TK_CAP)
    if tn is None:
        tn = _pick_tile(D_out, 128, _TN_CAP)
        # Single M tile (GEMV-like): split N into >=2 blocks so both v7x
        # TensorCores get a "parallel" grid point to work on.
        n_pad = _round_up(D_out, 128)
        if pl.cdiv(B, tm) == 1 and pl.cdiv(n_pad, tn) == 1 and n_pad >= 256:
            half_cap = max(128, (n_pad // 2) // 128 * 128)
            tn = _pick_tile(D_out, 128, half_cap)

    Mp, Np, Kp = _round_up(B, tm), _round_up(D_out, tn), _round_up(D_in, tk)

    # --- tiny-problem fallback: fixed pipeline overhead + padding dominate ---
    if use_pallas is None:
        use_pallas = Mp * Np * Kp >= 128 * 256 * 256
    if not use_pallas:
        out = lax.dot_general(x, w_t, (((1,), (0,)), ((), ()))) + bias
        return out.astype(out_dtype).reshape(*orig_shape[:-1], D_out)

    # --- zero-pad only when a dim is genuinely unaligned ----------------------
    xp = x if (Mp == B and Kp == D_in) else jnp.pad(x, ((0, Mp - B), (0, Kp - D_in)))
    wp = w_t if (Kp == D_in and Np == D_out) else jnp.pad(
        w_t, ((0, Kp - D_in), (0, Np - D_out)))
    bp = (bias if Np == D_out else jnp.pad(bias, (0, Np - D_out))).reshape(1, Np)

    grid = (Mp // tm, Np // tn, Kp // tk)
    # Multi-buffer the weight stream only when it is actually streaming
    # (single M tile and >=3 weight tiles to fetch).
    multibuffer_w = grid[0] == 1 and grid[1] * grid[2] >= 3

    cost = pl.CostEstimate(
        flops=2 * Mp * Np * Kp,
        transcendentals=0,
        bytes_accessed=(xp.size * xp.dtype.itemsize
                        + wp.size * wp.dtype.itemsize
                        + bp.size * bp.dtype.itemsize
                        + Mp * Np * jnp.dtype(out_dtype).itemsize),
    )

    out = pl.pallas_call(
        linear_kernel,
        out_shape=jax.ShapeDtypeStruct((Mp, Np), out_dtype),
        grid_spec=pltpu.PrefetchScalarGridSpec(
            num_scalar_prefetch=0,
            grid=grid,
            in_specs=[
                pl.BlockSpec((tm, tk), lambda i, j, k: (i, k)),   # activations
                _weight_spec(tk, tn, multibuffer=multibuffer_w),  # weights [K, N]
                pl.BlockSpec((1, tn), lambda i, j, k: (0, j)),    # bias
            ],
            out_specs=pl.BlockSpec((tm, tn), lambda i, j, k: (i, j)),
            scratch_shapes=[pltpu.VMEM((tm, tn), jnp.float32)],
        ),
        compiler_params=pltpu.CompilerParams(
            dimension_semantics=("parallel", "parallel", "arbitrary"),
            vmem_limit_bytes=32 * 1024 * 1024,
        ),
        cost_estimate=cost,
    )(xp, wp, bp)

    if Mp != B or Np != D_out:
        out = out[:B, :D_out]
    return out.reshape(*orig_shape[:-1], D_out)


if __name__ == "__main__":
    key = jax.random.PRNGKey(0)

    def make_params(k, d_in, d_out, dtype=jnp.float32):
        kw, kb = jax.random.split(k)
        bound = 1.0 / (d_in ** 0.5)
        w = jax.random.uniform(kw, (d_out, d_in), minval=-bound, maxval=bound, dtype=dtype)
        b = jax.random.uniform(kb, (d_out,), minval=-bound, maxval=bound, dtype=dtype)
        return w, b

    def reference(x, w, b):
        return lax.dot_general(x, w, (((1,), (1,)), ((), ())),
                               precision=lax.Precision.HIGHEST) + b

    # ---- small demo shape consistent with the module (batch=8, in=32, out=16) ----
    B, d_in, d_out = 8, 32, 16
    k_x, k_p, key = jax.random.split(key, 3)
    w, b = make_params(k_p, d_in, d_out)
    x = jax.random.normal(k_x, (B, d_in), dtype=jnp.float32)
    out = jax.block_until_ready(operator_forward(x, w, b, use_pallas=True))
    assert out.shape == (B, d_out)
    assert jnp.allclose(out, reference(x, w, b), atol=1e-5, rtol=1e-5)

    # ---- unaligned shape: exercises the M/N/K padding + output-slice path ----
    B1, d_in1, d_out1 = 13, 100, 40
    k_x1, k_p1, key = jax.random.split(key, 3)
    w1, b1 = make_params(k_p1, d_in1, d_out1)
    x1 = jax.random.normal(k_x1, (B1, d_in1), dtype=jnp.float32)
    out1 = jax.block_until_ready(operator_forward(x1, w1, b1, use_pallas=True))
    assert out1.shape == (B1, d_out1)
    assert jnp.allclose(out1, reference(x1, w1, b1), atol=1e-4, rtol=1e-4)

    # ---- larger multi-tile shape: zero padding, N split across cores ----
    B2, d_in2, d_out2 = 256, 1024, 384
    k_x2, k_p2, key = jax.random.split(key, 3)
    w2, b2 = make_params(k_p2, d_in2, d_out2)
    x2 = jax.random.normal(k_x2, (B2, d_in2), dtype=jnp.float32)
    out2 = jax.block_until_ready(operator_forward(x2, w2, b2))
    assert out2.shape == (B2, d_out2)
    assert jnp.allclose(out2, reference(x2, w2, b2), atol=2e-3, rtol=2e-3)

    # ---- bf16 path: bf16 operands on the MXU, f32 accumulator, bf16 output ----
    xb, wb, bb = (v.astype(jnp.bfloat16) for v in (x2, w2, b2))
    outb = jax.block_until_ready(operator_forward(xb, wb, bb))
    refb = reference(xb.astype(jnp.float32), wb.astype(jnp.float32),
                     bb.astype(jnp.float32))
    assert outb.dtype == jnp.bfloat16
    assert jnp.allclose(outb.astype(jnp.float32), refb, atol=5e-2, rtol=5e-2)

    print("KERNEL_OK")
</pallas_src>

<mosaic_0001>
module attributes {stable_mosaic.version = 11 : i64} {
  func.func @linear_kernel(%arg0: i32, %arg1: i32, %arg2: i32, %arg3: memref<8x128xf32, #tpu.memory_space<vmem>>, %arg4: memref<128x128xf32, #tpu.memory_space<vmem>>, %arg5: memref<1x128xf32, #tpu.memory_space<vmem>>, %arg6: memref<8x128xf32, #tpu.memory_space<vmem>>, %arg7: memref<8x128xf32, #tpu.memory_space<vmem>>) attributes {dimension_semantics = [#tpu.dimension_semantics<parallel>, #tpu.dimension_semantics<parallel>, #tpu.dimension_semantics<arbitrary>], iteration_bounds = array<i64: 1, 1, 1>, scalar_prefetch = 0 : i64, scratch_operands = 1 : i64, tpu.core_type = #tpu.core_type<tc>, window_params = [{transform_indices = @transform_0, window_bounds = array<i64: 8, 128>}, {transform_indices = @transform_1, window_bounds = array<i64: 128, 128>}, {transform_indices = @transform_2, window_bounds = array<i64: 1, 128>}, {transform_indices = @transform_3, window_bounds = array<i64: 8, 128>}]} {
    %c0_i32 = arith.constant 0 : i32
    %0 = arith.cmpi eq, %arg2, %c0_i32 : i32
    %1 = arith.extui %0 : i1 to i32
    %c0_i32_0 = arith.constant 0 : i32
    %2 = arith.cmpi ne, %1, %c0_i32_0 : i32
    scf.if %2 {
      %cst_10 = arith.constant 0.000000e+00 : f32
      %12 = vector.broadcast %cst_10 : f32 to vector<8x128xf32>
      %c0_11 = arith.constant 0 : index
      %c0_12 = arith.constant 0 : index
      %13 = vector.load %arg7[%c0_11, %c0_12] : memref<8x128xf32, #tpu.memory_space<vmem>>, vector<8x128xf32>
      tpu.vector_store %arg7[%c0_11, %c0_12], %12 {strides = array<i32>} : memref<8x128xf32, #tpu.memory_space<vmem>>, vector<8x128xf32>,
    } else {
    }
    %c0 = arith.constant 0 : index
    %c0_1 = arith.constant 0 : index
    %3 = vector.load %arg7[%c0, %c0_1] : memref<8x128xf32, #tpu.memory_space<vmem>>, vector<8x128xf32>
    %c0_2 = arith.constant 0 : index
    %c0_3 = arith.constant 0 : index
    %4 = vector.load %arg3[%c0_2, %c0_3] : memref<8x128xf32, #tpu.memory_space<vmem>>, vector<8x128xf32>
    %c0_4 = arith.constant 0 : index
    %c0_5 = arith.constant 0 : index
    %5 = vector.load %arg4[%c0_4, %c0_5] : memref<128x128xf32, #tpu.memory_space<vmem>>, vector<128x128xf32>
    %cst = arith.constant dense<0.000000e+00> : vector<8x128xf32>
    %6 = tpu.matmul %4, %5, %cst {dimension_numbers = #tpu.dot_dimension_numbers<[1], [0], [0], [1], [0, 0, 1, 1], [], []>} : vector<8x128xf32>, vector<128x128xf32>, vector<8x128xf32> -> vector<8x128xf32>
    %7 = arith.addf %3, %6 : vector<8x128xf32>
    %c0_6 = arith.constant 0 : index
    %c0_7 = arith.constant 0 : index
    %8 = vector.load %arg7[%c0_6, %c0_7] : memref<8x128xf32, #tpu.memory_space<vmem>>, vector<8x128xf32>
    tpu.vector_store %arg7[%c0_6, %c0_7], %7 {strides = array<i32>} : memref<8x128xf32, #tpu.memory_space<vmem>>, vector<8x128xf32>,
    %c0_i32_8 = arith.constant 0 : i32
    %9 = arith.cmpi eq, %arg2, %c0_i32_8 : i32
    %10 = arith.extui %9 : i1 to i32
    %c0_i32_9 = arith.constant 0 : i32
    %11 = arith.cmpi ne, %10, %c0_i32_9 : i32
    scf.if %11 {
      %c0_10 = arith.constant 0 : index
      %c0_11 = arith.constant 0 : index
      %12 = vector.load %arg7[%c0_10, %c0_11] : memref<8x128xf32, #tpu.memory_space<vmem>>, vector<8x128xf32>
      %c0_12 = arith.constant 0 : index
      %c0_13 = arith.constant 0 : index
      %13 = vector.load %arg5[%c0_12, %c0_13] : memref<1x128xf32, #tpu.memory_space<vmem>>, vector<1x128xf32>
      %14 = vector.broadcast %13 : vector<1x128xf32> to vector<8x128xf32>
      %15 = arith.addf %12, %14 : vector<8x128xf32>
      %c0_14 = arith.constant 0 : index
      %c0_15 = arith.constant 0 : index
      %16 = vector.load %arg6[%c0_14, %c0_15] : memref<8x128xf32, #tpu.memory_space<vmem>>, vector<8x128xf32>
      tpu.vector_store %arg6[%c0_14, %c0_15], %15 {strides = array<i32>} : memref<8x128xf32, #tpu.memory_space<vmem>>, vector<8x128xf32>,
    } else {
    }
    return
  }
  func.func @transform_0(%arg0: i32, %arg1: i32, %arg2: i32) -> (i32, i32) {
    %c0_i32 = arith.constant 0 : i32
    return %arg0, %arg2 : i32, i32
  }
  func.func @transform_1(%arg0: i32, %arg1: i32, %arg2: i32) -> (i32, i32) {
    %c0_i32 = arith.constant 0 : i32
    return %arg2, %arg1 : i32, i32
  }
  func.func @transform_2(%arg0: i32, %arg1: i32, %arg2: i32) -> (i32, i32) {
    %c0_i32 = arith.constant 0 : i32
    %c0_i32_0 = arith.constant 0 : i32
    return %c0_i32, %arg1 : i32, i32
  }
  func.func @transform_3(%arg0: i32, %arg1: i32, %arg2: i32) -> (i32, i32) {
    %c0_i32 = arith.constant 0 : i32
    return %arg0, %arg1 : i32, i32
  }
}

</mosaic_0001>

<bundles_post_ra>
// kernel: tpu_custom_call.1
= control target key start
LH: loop header
LB: loop body
LE: loop exit
PB: predicated region body
PF: predicated region fallthrough
CT: control target
= control target key end

     0   :  { %8 = vsyncpa [#allocation4], 0  ;;  %s239_s0 = inlined_call_operand.hbm [shape: f32[8,128], index: 0, kind: input, shape index: {}]   ;;  %s240_s1 = inlined_call_operand.hbm [shape: f32[128,128], index: 1, kind: input, shape index: {}]   ;;  %s241_s2 = inlined_call_operand.vmem [shape: f32[1,128], index: 2, kind: input, shape index: {}]   ;;  %s242_s3 = inlined_call_operand.hbm [shape: f32[8,128], index: 3, kind: output, shape index: {}]  }
   0x1   :  { %9 = vsyncpa [#allocation7], 0 }
   0x2   :  { %10 = vsyncpa [#allocation5], 0  ;;  %s16_s14 = sshll.u32 %s239_s0, 4  ;;  %s202_s15 = smov [#allocation3]   ;;  %s17_s14 = int_to_ptr.hbm [resolvable:$true] %s16_s14 }
   0x3   :  { %s18_s16 = sshll.u32 %s202_s15, 4  ;;  %s26_s19 = sshll.u32 %s240_s1, 4  ;;  %s19_s16 = int_to_ptr.vmem [resolvable:$true] %s18_s16  ;;  %s27_s19 = int_to_ptr.hbm [resolvable:$true] %s26_s19 }
   0x4   :  { %21 = dma.hbm_to_vmem [thread:$0]  %s17_s14, 128, %s19_s16, [#allocation4]  }
   0x5   :  { %s203_s20 = smov [#allocation6]   ;;  %s204_s22 = smov 128  }
   0x6   :  { %s28_s21 = sshll.u32 %s203_s20, 4  ;;  %s205_s23 = smov 8   ;;  %s29_s21 = int_to_ptr.vmem [resolvable:$true] %s28_s21 }
   0x7   :  { %34 = dma.hbm_to_vmem [thread:$0]  %s27_s19, 2048, %s29_s21, [#allocation7], %s204_s22, %s204_s22, %s205_s23  }
   0x8   :  { %196 = dma.done.wait [#allocation4], 128  }
   0x9   :  { %197 = vsyncadd [#allocation4], 4294967168 }
   0xa   :  { %198 = dma.done.wait [#allocation7], 2048  }
   0xb   :  { %199 = vsyncadd [#allocation7], 4294965248  ;;  %v67_v0 = vld [vmem:[#allocation6 + $0x78] sm:$0xff]  ;;  %v66_v1 = vld [vmem:[#allocation6 + $0x70] sm:$0xff]  ;;  %s206_s24 = smov [#allocation8]   ;;  %s107_s28 = sshll.u32 %s242_s3, 4  ;;  %s108_s28 = int_to_ptr.hbm [resolvable:$true] %s107_s28 }
   0xc   :  { %68 = vmatpush.msra.mxu0 %v67_v0  ;;  %v65_v2 = vld [vmem:[#allocation6 + $0x68] sm:$0xff]  ;;  %v64_v3 = vld [vmem:[#allocation6 + $0x60] sm:$0xff]  ;;  %v63_v4 = vld [vmem:[#allocation6 + $0x58] sm:$0xff]  ;;  %s105_s25 = sshll.u32 %s206_s24, 4  ;;  %s106_s25 = int_to_ptr.vmem [resolvable:$true] %s105_s25 }
   0xd   :  { %v62_v5 = vld [vmem:[#allocation6 + $0x50] sm:$0xff]  ;;  %v61_v6 = vld [vmem:[#allocation6 + $0x48] sm:$0xff]  ;;  %v60_v7 = vld [vmem:[#allocation6 + $0x40] sm:$0xff] }
   0xe   :  { %69 = vmatpush.msra.mxu0 %v66_v1  ;;  %v59_v8 = vld [vmem:[#allocation6 + $0x38] sm:$0xff]  ;;  %v58_v9 = vld [vmem:[#allocation6 + $0x30] sm:$0xff]  ;;  %v57_v10 = vld [vmem:[#allocation6 + $0x28] sm:$0xff] }
   0xf   :  { %v56_v11 = vld [vmem:[#allocation6 + $0x20] sm:$0xff]  ;;  %v55_v12 = vld [vmem:[#allocation6 + $0x18] sm:$0xff]  ;;  %v54_v13 = vld [vmem:[#allocation6 + $0x10] sm:$0xff] }
  0x10   :  { %70 = vmatpush.msra.mxu0 %v65_v2  ;;  %v53_v14 = vld [vmem:[#allocation6 + $0x8] sm:$0xff]  ;;  %v52_v15 = vld [vmem:[#allocation6] sm:$0xff]  ;;  %v51_v16 = vld [vmem:[#allocation3] sm:$0xff] }
  0x11   :  { %v123_v17 = vld [vmem:[%s241_s2] ss:$0 sm:$0xff] }
  0x12   :  { %71 = vmatpush.msra.mxu0 %v64_v3 }
  0x14   :  { %72 = vmatpush.msra.mxu0 %v63_v4 }
  0x16   :  { %73 = vmatpush.msra.mxu0 %v62_v5 }
  0x18   :  { %74 = vmatpush.msra.mxu0 %v61_v6 }
  0x1a   :  { %75 = vmatpush.msra.mxu0 %v60_v7 }
  0x1c   :  { %76 = vmatpush.msra.mxu0 %v59_v8 }
  0x1e   :  { %77 = vmatpush.msra.mxu0 %v58_v9 }
  0x20   :  { %78 = vmatpush.msra.mxu0 %v57_v10 }
  0x22   :  { %79 = vmatpush.msra.mxu0 %v56_v11 }
  0x24   :  { %80 = vmatpush.msra.mxu0 %v55_v12 }
  0x26   :  { %81 = vmatpush.msra.mxu0 %v54_v13 }
  0x28   :  { %82 = vmatpush.msra.mxu0 %v53_v14 }
  0x2a   :  { %83 = vmatpush.msra.mxu0 %v52_v15 }
  0x2b   :  { %84 = vmatmul.f32.vlgmr.msra.gmra.mxu0 %v51_v16 }
  0xa8   :  { %v85_v18 = vpop.f32.mrf.mxu0 }
  0xa9   :  { %v98_v19 = vadd.f32 %v123_v17, %v85_v18 }
  0xab   :  { %99 = vst [vmem:[#allocation8] sm:$0xff] %v98_v19 }
  0xac   :  { %110 = dma.vmem_to_hbm [thread:$0]  %s106_s25, 128, %s108_s28, [#allocation5]  }
  0xad   :  { %200 = dma.done.wait [#allocation5], 128  }
  0xae   :  { %201 = vsyncadd [#allocation5], 4294967168 }
  0xaf   :  { %115 = vsyncpa [#allocation4], 1 }
  0xb0   :  { %116 = vsyncpa [#allocation7], 1 }
  0xb1   :  { %117 = vsyncpa [#allocation5], 1 }

</bundles_post_ra>
